<compile_context>
chip_gen: v7x
topology: tpu7x:2x2x1
jax: 0.10.0
libtpu: 0.0.40
codegen_flags: <defaults>
</compile_context>

<pallas_src>
import math
import functools

import numpy as np
import jax
import jax.numpy as jnp
from jax.experimental import pallas as pl
from jax.experimental.pallas import tpu as pltpu


def _timesteps_kernel(t_ref, out_ref, *, half_dim, out_dim, scale,
                      flip_sin_to_cos, downscale_freq_shift, max_period):
    # t_ref:   [TILE_N, 1]       f32
    # out_ref: [TILE_N, out_dim] out_dtype
    t = t_ref[...]                                                  # (TILE_N, 1)

    # Per-lane frequency index in the *final* output order.
    # (Built per grid step; with the large row tiles below the grid has 1-2 steps,
    #  so this (1, out_dim) iota+exp is negligible.)
    j = jax.lax.broadcasted_iota(jnp.int32, (1, out_dim), 1)        # lane index
    in_second_half = j >= half_dim
    k = jnp.where(in_second_half, j - half_dim, j).astype(jnp.float32)

    # Same op order as the PyTorch reference: (-log(P) * k) / (half - shift).
    exponent = (jnp.float32(-math.log(max_period)) * k) / jnp.float32(
        half_dim - downscale_freq_shift)
    freqs = jnp.exp(exponent)                                       # (1, out_dim)

    if out_dim > 2 * half_dim:
        # Odd num_channels: force the trailing pad lane to exactly 0 (sin(0)=0).
        freqs = jnp.where(j >= 2 * half_dim, jnp.float32(0.0), freqs)

    if scale != 1.0:                                                # static skip
        freqs = freqs * jnp.float32(scale)

    # cos(x) == sin(x + pi/2): phase offset on the cos half -> a single sin and
    # one unmasked full-width store.
    half_pi = jnp.float32(math.pi / 2.0)
    if flip_sin_to_cos:
        cos_lane = j < half_dim                                     # [cos, sin(, 0)]
    else:
        cos_lane = in_second_half & (j < 2 * half_dim)              # [sin, cos(, 0)]
    phase = jnp.where(cos_lane, half_pi, jnp.float32(0.0))          # (1, out_dim)

    emb = t * freqs + phase                                         # broadcast outer product
    out_ref[...] = jnp.sin(emb).astype(out_ref.dtype)


def timesteps_forward(timesteps,
                      num_channels: int,
                      flip_sin_to_cos: bool,
                      downscale_freq_shift: float,
                      scale: float = 1.0,
                      max_period: int = 10000,
                      tile_n: int = 1024,
                      out_dtype=jnp.float32):
    """JAX/Pallas equivalent of Timesteps.forward(timesteps) -> [N, num_channels]."""
    assert timesteps.ndim == 1, "Timesteps should be a 1d-array"
    half_dim = num_channels // 2
    assert half_dim >= 1, "num_channels must be >= 2"
    assert float(half_dim) != float(downscale_freq_shift), \
        "half_dim == downscale_freq_shift divides by zero"

    n = timesteps.shape[0]
    t_col = timesteps.astype(jnp.float32).reshape(n, 1)             # (N, 1)

    # Row tile: whole array for small N (block == full extent is always legal),
    # otherwise a fixed multiple-of-8 tile; pl.cdiv grid + masked last block
    # handles any N without degenerate tiny tiles or unbounded VMEM blocks.
    if n <= tile_n:
        tn = n
    else:
        tn = max((tile_n // 8) * 8, 8)
    grid = (pl.cdiv(n, tn),)

    kernel = functools.partial(_timesteps_kernel,
                               half_dim=half_dim,
                               out_dim=num_channels,
                               scale=scale,
                               flip_sin_to_cos=flip_sin_to_cos,
                               downscale_freq_shift=downscale_freq_shift,
                               max_period=max_period)

    out = pl.pallas_call(
        kernel,
        out_shape=jax.ShapeDtypeStruct((n, num_channels), out_dtype),
        grid=grid,
        in_specs=[pl.BlockSpec((tn, 1), lambda i: (i, 0))],
        out_specs=pl.BlockSpec((tn, num_channels), lambda i: (i, 0)),
        compiler_params=pltpu.CompilerParams(
            dimension_semantics=("parallel",)),
    )(t_col)
    return out


def _reference_np(timesteps, num_channels, flip_sin_to_cos, downscale_freq_shift,
                  scale=1.0, max_period=10000):
    """float64 NumPy reference (ground truth), mirrors the PyTorch module."""
    t = np.asarray(timesteps, dtype=np.float64)
    half_dim = num_channels // 2
    exponent = (-math.log(max_period)
                * np.arange(half_dim, dtype=np.float64)) / (half_dim - downscale_freq_shift)
    emb = np.exp(exponent)
    emb = t[:, None] * emb[None, :]
    emb = scale * emb
    emb = np.concatenate([np.sin(emb), np.cos(emb)], axis=-1)
    if flip_sin_to_cos:
        emb = np.concatenate([emb[:, half_dim:], emb[:, :half_dim]], axis=-1)
    if num_channels % 2 == 1:
        emb = np.pad(emb, ((0, 0), (0, 1)))
    return emb


if __name__ == "__main__":
    key = jax.random.PRNGKey(0)
    k1, k2 = jax.random.split(key)

    # Test 1: typical even-channel config (flip=True, shift=0, scale=1), single block.
    N1, C1 = 8, 32
    t1 = jax.random.uniform(k1, (N1,), jnp.float32, minval=0.0, maxval=1000.0)
    out1 = jax.block_until_ready(
        timesteps_forward(t1, C1, True, 0.0, 1.0))
    ref1 = _reference_np(np.asarray(t1), C1, True, 0.0, 1.0)
    assert out1.shape == (N1, C1)
    err1 = float(np.max(np.abs(np.asarray(out1, dtype=np.float64) - ref1)))
    # Phases reach ~1e3, so f32 phase quantization alone allows ~1e-4 abs error
    # on the O(1) sinusoid values; 2e-3 is a tight but robust bound.
    assert err1 < 2e-3, f"test1 max abs err {err1}"

    # Test 2: odd channels, no flip, nonzero shift, scale=2, multi-block grid with
    # a masked (padded) last block (tile_n=8 only to exercise the grid path at
    # small N; production default stays 1024).
    N2, C2 = 20, 33
    t2 = jax.random.uniform(k2, (N2,), jnp.float32, minval=0.0, maxval=500.0)
    out2 = jax.block_until_ready(
        timesteps_forward(t2, C2, False, 1.0, 2.0, tile_n=8))
    ref2 = _reference_np(np.asarray(t2), C2, False, 1.0, 2.0)
    assert out2.shape == (N2, C2)
    err2 = float(np.max(np.abs(np.asarray(out2, dtype=np.float64) - ref2)))
    assert err2 < 2e-3, f"test2 max abs err {err2}"

    print("KERNEL_OK")
</pallas_src>

<mosaic_0001>
module attributes {stable_mosaic.version = 11 : i64} {
  func.func @_timesteps_kernel(%arg0: i32, %arg1: memref<8x1xf32, #tpu.memory_space<vmem>>, %arg2: memref<8x32xf32, #tpu.memory_space<vmem>>) attributes {dimension_semantics = [#tpu.dimension_semantics<parallel>], iteration_bounds = array<i64: 1>, scalar_prefetch = 0 : i64, scratch_operands = 0 : i64, tpu.core_type = #tpu.core_type<tc>, window_params = [{transform_indices = @transform_0, window_bounds = array<i64: 8, 1>}, {transform_indices = @transform_1, window_bounds = array<i64: 8, 32>}]} {
    %c0 = arith.constant 0 : index
    %c0_0 = arith.constant 0 : index
    %0 = vector.load %arg1[%c0, %c0_0] : memref<8x1xf32, #tpu.memory_space<vmem>>, vector<8x1xf32>
    %1 = tpu.iota {dimensions = array<i32: 1>} : vector<1x32xi32>
    %c16_i32 = arith.constant 16 : i32
    %2 = vector.broadcast %c16_i32 : i32 to vector<1x32xi32>
    %3 = arith.cmpi sge, %1, %2 : vector<1x32xi32>
    %c16_i32_1 = arith.constant 16 : i32
    %4 = vector.broadcast %c16_i32_1 : i32 to vector<1x32xi32>
    %5 = arith.subi %1, %4 : vector<1x32xi32>
    %6 = arith.select %3, %5, %1 : vector<1x32xi1>, vector<1x32xi32>
    %7 = arith.sitofp %6 : vector<1x32xi32> to vector<1x32xf32>
    %cst = arith.constant -9.21034049 : f32
    %8 = vector.broadcast %cst : f32 to vector<1x32xf32>
    %9 = arith.mulf %8, %7 : vector<1x32xf32>
    %cst_2 = arith.constant 1.600000e+01 : f32
    %10 = vector.broadcast %cst_2 : f32 to vector<1x32xf32>
    %11 = arith.divf %9, %10 : vector<1x32xf32>
    %12 = math.exp %11 : vector<1x32xf32>
    %c16_i32_3 = arith.constant 16 : i32
    %13 = vector.broadcast %c16_i32_3 : i32 to vector<1x32xi32>
    %14 = arith.cmpi slt, %1, %13 : vector<1x32xi32>
    %cst_4 = arith.constant 1.57079637 : f32
    %cst_5 = arith.constant 0.000000e+00 : f32
    %15 = vector.broadcast %cst_4 : f32 to vector<1x32xf32>
    %16 = vector.broadcast %cst_5 : f32 to vector<1x32xf32>
    %17 = arith.select %14, %15, %16 : vector<1x32xi1>, vector<1x32xf32>
    %18 = vector.broadcast %0 : vector<8x1xf32> to vector<8x32xf32>
    %19 = vector.broadcast %12 : vector<1x32xf32> to vector<8x32xf32>
    %20 = arith.mulf %18, %19 : vector<8x32xf32>
    %21 = vector.broadcast %17 : vector<1x32xf32> to vector<8x32xf32>
    %22 = arith.addf %20, %21 : vector<8x32xf32>
    %23 = math.sin %22 : vector<8x32xf32>
    %c0_6 = arith.constant 0 : index
    %c0_7 = arith.constant 0 : index
    %24 = vector.load %arg2[%c0_6, %c0_7] : memref<8x32xf32, #tpu.memory_space<vmem>>, vector<8x32xf32>
    tpu.vector_store %arg2[%c0_6, %c0_7], %23 {strides = array<i32>} : memref<8x32xf32, #tpu.memory_space<vmem>>, vector<8x32xf32>,
    return
  }
  func.func @transform_0(%arg0: i32) -> (i32, i32) {
    %c0_i32 = arith.constant 0 : i32
    %c0_i32_0 = arith.constant 0 : i32
    return %arg0, %c0_i32 : i32, i32
  }
  func.func @transform_1(%arg0: i32) -> (i32, i32) {
    %c0_i32 = arith.constant 0 : i32
    %c0_i32_0 = arith.constant 0 : i32
    return %arg0, %c0_i32 : i32, i32
  }
}

</mosaic_0001>

<bundles_post_ra>
// kernel: tpu_custom_call.1
= control target key start
LH: loop header
LB: loop body
LE: loop exit
PB: predicated region body
PF: predicated region fallthrough
CT: control target
= control target key end

     0   :  { %v199_v1 = vmov 0   ;;  %s254_s0 = inlined_call_operand.vmem [shape: f32[8,1], index: 0, kind: input, shape index: {}]   ;;  %s255_s1 = inlined_call_operand.hbm [shape: f32[8,32], index: 1, kind: output, shape index: {}]  }
   0x1   :  { %v9_v0 = vld [vmem:[%s254_s0] sm:$0xff]  ;;  %168 = vset.pattern.permute.xlu0 %v199_v1 }
   0x2   :  { %6 = vsyncpa [#allocation3], 0  ;;  %25 = vperm.xlu0 %168, %v9_v0   ;;  %v10_v2 = vlaneseq  ;;  %v200_v11 = vmov 0.0   ;;  %v201_v27 = vmov 2102212464   ;;  %s207_s0 = smov [#allocation2]  }
   0x3   :  { %v202_v29 = vmov 920167782   ;;  %v203_v33 = vmov 1326507024   ;;  %v204_v35 = vmov 683565275  }
   0x4   :  { %v11_v3 = vand.u32 127, %v10_v2  ;;  %v205_v37 = vmov 2475754826   ;;  %v206_v40 = vmov 2131351028   ;;  %s142_s8 = sshll.u32 %s207_s0, 4  ;;  %s143_s8 = int_to_ptr.vmem [resolvable:$true] %s142_s8 }
   0x5   :  { %vm134_vm14 = vcmask 261120   ;;  %s175_s9 = scalar_lea.vmem %s143_s8, 128  ;;  %p180_p1 = scmp.lt.s32.totalorder %s143_s8, %s143_s8 }
   0x6   :  { %v150_v4 = vadd.s32 4294967280, %v11_v3  ;;  %vm12_vm0 = vcmp.ge.s32.totalorder %v11_v3, 16  ;;  %vm21_vm1 = vcmp.lt.s32.totalorder %v11_v3, 16  ;;  %p176_p0 = scmp.ne.s32.totalorder %s143_s8, %s175_s9  ;;  %p181_p2 = scmp.lt.s32.totalorder %s175_s9, %s175_s9 }
   0x7   :  { %v22_v12 = vsel %vm21_vm1, 1.5707964, %v200_v11 }
   0x8   :  { %v14_v5 = vsel %vm12_vm0, %v150_v4, %v11_v3  ;;  %p182_p3 = por %p181_p2, %p180_p1 }
   0x9   :  { %v15_v6 = vcvt.s32.f32 %v14_v5 }
   0xa   :  { %p183_p4 = pnand %p182_p3, %p176_p0 }
   0xb   :  { %v16_v7 = vmul.f32 -9.2103405, %v15_v6 }
   0xd   :  { %v18_v8 = vmul.f32 0.0625, %v16_v7 }
   0xf   :  { %v19_v9 = vmul.f32 1.442695, %v18_v8 }
  0x11   :  { %169 = vpow2.f32 %v19_v9 }
  0x1b   :  { %v170_v10 = vpop.eup %169 }
  0x81   :  { %v26_v13 = vpop.permute.xlu0 %25 }
  0x82   :  { %v28_v14 = vmul.f32 %v170_v10, %v26_v13 }
  0x84   :  { %v221_v15 = vadd.f32 %v28_v14, %v22_v12 }
  0x86   :  { %v33_v16 = vand.u32 2139095040, %v221_v15  ;;  %v30_v17 = vand.u32 2147483647, %v221_v15  ;;  %vm32_vm9 = vcmp.lt.s32.totalorder %v221_v15, 0  ;;  %vm122_vm15 = vweird.f32 %v221_v15 }
  0x88   :  { %v34_v18 = vshrl.u32 %v33_v16, 23  ;;  %v37_v20 = vand.u32 8388607, %v30_v17  ;;  %vm31_vm10 = vcmp.le.f32.partialorder %v30_v17, 0.7853982 }
  0x8a   :  { %v151_v19 = vadd.s32 4294967169, %v34_v18  ;;  %v38_v23 = vor.u32 8388608, %v37_v20 }
  0x8c   :  { %v40_v21 = vadd.s32 1, %v151_v19  ;;  %v78_v31 = vshll.u32 %v38_v23, 8 }
  0x8e   :  { %vm41_vm2 = vcmp.gt.s32.totalorder %v40_v21, 0 }
  0x8f   :  { %v42_v22 = vsel %vm41_vm2, %v40_v21, 0 }
  0x90   :  { %v44_v24 = vand.u32 31, %v42_v22  ;;  %v43_v25 = vshrl.u32 %v42_v22, 5 }
  0x92   :  { %v45_v26 = vsub.s32 32, %v44_v24  ;;  %v56_v28 = vshll.u32 %v201_v27, %v44_v24  ;;  %v59_v30 = vshll.u32 %v202_v29, %v44_v24  ;;  %v47_v36 = vshll.u32 %v204_v35, %v44_v24 }
  0x93   :  { %v50_v39 = vshll.u32 %v205_v37, %v44_v24  ;;  %v53_v42 = vshll.u32 %v206_v40, %v44_v24  ;;  %vm65_vm3 = vcmp.lt.s32.totalorder %v43_v25, 4  ;;  %vm62_vm4 = vcmp.lt.s32.totalorder %v43_v25, 1 }
  0x94   :  { %v57_v32 = vshrl.u32 %v202_v29, %v45_v26  ;;  %v60_v34 = vshrl.u32 %v203_v33, %v45_v26  ;;  %v48_v38 = vshrl.u32 %v205_v37, %v45_v26  ;;  %v51_v41 = vshrl.u32 %v206_v40, %v45_v26 }
  0x95   :  { %v54_v43 = vshrl.u32 %v201_v27, %v45_v26  ;;  %v46_v47 = vshrl.u32 %v204_v35, %v45_v26  ;;  %vm63_vm5 = vcmp.lt.s32.totalorder %v43_v25, 2  ;;  %vm64_vm6 = vcmp.lt.s32.totalorder %v43_v25, 3 }
  0x96   :  { %v58_v44 = vor.u32 %v57_v32, %v56_v28  ;;  %v61_v45 = vor.u32 %v60_v34, %v59_v30  ;;  %v49_v46 = vor.u32 %v48_v38, %v47_v36  ;;  %v52_v48 = vor.u32 %v51_v41, %v50_v39 }
  0x97   :  { %v55_v49 = vor.u32 %v54_v43, %v53_v42 }
  0x98   :  { %v71_v50 = vsel %vm65_vm3, %v58_v44, 920167782  ;;  %v75_v51 = vsel %vm65_vm3, %v61_v45, 1326507024  ;;  %v70_v53 = vsel %vm62_vm4, %v49_v46, %v52_v48  ;;  %v66_v56 = vsel %vm62_vm4, %v46_v47, %v49_v46 }
  0x99   :  { %v67_v52 = vsel %vm65_vm3, %v55_v49, 2102212464  ;;  %v72_v54 = vsel %vm64_vm6, %v55_v49, %v71_v50  ;;  %v74_v55 = vsel %vm62_vm4, %v52_v48, %v55_v49  ;;  %v76_v59 = vsel %vm64_vm6, %v58_v44, %v75_v51 }
  0x9a   :  { %v68_v57 = vsel %vm64_vm6, %v52_v48, %v67_v52  ;;  %v73_v58 = vsel %vm63_vm5, %v70_v53, %v72_v54  ;;  %v77_v60 = vsel %vm63_vm5, %v74_v55, %v76_v59 }
  0x9b   :  { %v227_v61 = vmul.u32.u64.low %v78_v31, %v73_v58  ;;  %v228_v62 = vmul.u32.u64.high %v78_v31, %v73_v58, %v227_v61  ;;  %v230_v63 = vmul.u32.u64.low %v78_v31, %v77_v60  ;;  %v231_v0 = vmul.u32.u64.high %v78_v31, %v77_v60, %v230_v63 }
  0x9c   :  { %v69_v1 = vsel %vm63_vm5, %v66_v56, %v68_v57 }
  0x9d   :  { %v88_v2 = vadd.s32 1, %v228_v62  ;;  %v85_v3 = vmul.u32 %v78_v31, %v69_v1  ;;  %vm87_vm7 = vc.u32 %v231_v0, %v227_v61  ;;  %v86_v16 = vadd.s32 %v227_v61, %v231_v0 }
  0x9f   :  { %v89_v4 = vsel %vm87_vm7, %v88_v2, %v228_v62 }
  0xa0   :  { %v90_v5 = vadd.s32 %v89_v4, %v85_v3 }
  0xa2   :  { %v91_v6 = vadd.s32 536870912, %v90_v5 }
  0xa4   :  { %v92_v7 = vshrl.u32 %v91_v6, 30 }
  0xa6   :  { %v93_v8 = vshll.u32 %v92_v7, 30  ;;  %v116_v29 = vsub.s32 4, %v92_v7 }
  0xa8   :  { %v94_v9 = vsub.s32 %v90_v5, %v93_v8  ;;  %v117_v32 = vsel %vm32_vm9, %v116_v29, %v92_v7 }
  0xa9   :  { %v119_v34 = vsel %vm31_vm10, 0, %v117_v32 }
  0xaa   :  { %v96_v10 = vsub.s32 0, %v94_v9  ;;  %v123_v35 = vadd.s32 3, %v119_v34 }
  0xac   :  { %v152_v11 = vmin.u32 %v96_v10, %v94_v9  ;;  %v124_v36 = vand.u32 3, %v123_v35 }
  0xae   :  { %v98_v12 = vclz %v152_v11  ;;  %vm129_vm11 = vcmp.eq.s32.totalorder %v124_v36, 2  ;;  %vm126_vm12 = vcmp.eq.s32.totalorder %v124_v36, 0  ;;  %vm125_vm13 = vcmp.lt.s32.totalorder %v124_v36, 2 }
  0xb0   :  { %v153_v13 = vadd.s32 4294967294, %v98_v12 }
  0xb2   :  { %vm154_vm8 = vcmp.lt.s32.totalorder %v153_v13, 0 }
  0xb3   :  { %v101_v14 = vsel %vm154_vm8, 0, %v153_v13 }
  0xb4   :  { %v102_v18 = vsub.s32 32, %v101_v14  ;;  %v106_v19 = vsub.s32 4294967266, %v101_v14  ;;  %v103_v20 = vshll.u32 %v94_v9, %v101_v14 }
  0xb6   :  { %v104_v21 = vshrl.u32 %v86_v16, %v102_v18  ;;  %v107_v22 = vadd.s32 127, %v106_v19 }
  0xb8   :  { %v105_v23 = vor.u32 %v104_v21, %v103_v20  ;;  %v108_v24 = vshll.u32 %v107_v22, 23 }
  0xba   :  { %v109_v25 = vor.u32 4788187, %v108_v24  ;;  %v112_v27 = vcvt.s32.f32 %v105_v23 }
  0xbc   :  { %v110_v26 = vand.u32 2147483647, %v109_v25 }
  0xbe   :  { %v113_v28 = vmul.f32 %v112_v27, %v110_v26 }
  0xc0   :  { %v114_v30 = vxor.u32 2147483648, %v113_v28 }
  0xc2   :  { %v115_v31 = vsel %vm32_vm9, %v114_v30, %v113_v28 }
  0xc3   :  { %v118_v33 = vsel %vm31_vm10, %v221_v15, %v115_v31 }
  0xc4   :  { %171 = vcosq.f32 %v118_v33 }
  0xc5   :  { %173 = vsinq.f32 %v118_v33 }
  0xce   :  { %v172_v37 = vpop.eup %171 }
  0xcf   :  { %v174_v38 = vpop.eup %173  ;;  %v130_v39 = vxor.u32 2147483648, %v172_v37 }
  0xd0   :  { %v127_v40 = vxor.u32 2147483648, %v174_v38 }
  0xd1   :  { %v131_v41 = vsel %vm129_vm11, %v130_v39, %v174_v38 }
  0xd2   :  { %v128_v17 = vsel %vm126_vm12, %v172_v37, %v127_v40 }
  0xd3   :  { %v132_v42 = vsel %vm125_vm13, %v128_v17, %v131_v41 }
  0xd4   :  { %v133_v43 = vsel %vm122_vm15, nan, %v132_v42 }
  0xd5   :  { %135 = vst.msk [vmem:[#allocation2] sm:$0xff] %vm134_vm14, %v133_v43 }
  0xd6   :  { %186 = shalt.err (!%p183_p4)
}
  0xd7   :  { %s187_s12 = scalar_lea.hbm %s255_s1, 128 }
  0xd8   :  { %p188_p5 = scmp.ne.s32.totalorder %s255_s1, %s187_s12  ;;  %p191_p6 = scmp.lt.u32.totalorder %s187_s12, %s255_s1 }
  0xda   :  { %p193_p7 = pnand %p191_p6, %p188_p5 }
  0xdc   :  { %196 = shalt.err (!%p193_p7)
}
  0xdd   :  { %145 = dma.vmem_to_hbm [thread:$0]  %s143_s8, 128, %s255_s1, [#allocation3]  }
  0xde   :  { %197 = dma.done.wait [#allocation3], 128  }
  0xdf   :  { %198 = vsyncadd [#allocation3], 4294967168 }
  0xe0   :  { %149 = vsyncpa [#allocation3], 1 }

</bundles_post_ra>
